<compile_context>
chip_gen: v6e
topology: v6e:2x2x1
jax: 0.10.0
libtpu: 0.0.40
codegen_flags: <defaults>
</compile_context>

<pallas_src>
import functools

import jax
import jax.numpy as jnp
from jax.experimental import pallas as pl
from jax.experimental.pallas import tpu as pltpu

BN_EPS = 1e-5
LANE = 128
SUBLANE = 8


def _round_up(x, m):
    return (x + m - 1) // m * m


# ----------------------------- kernel bodies -----------------------------
def _make_feature_kernel(n_layers, sets_per_tile, n_pad, n_real, cast_dtype, do_cast):
    """Feature MLP over a (tile_rows, dim_x) slab + per-set mean -> (sets_per_tile, 128)."""

    def kernel(x_ref, *rest):
        phi_ref = rest[-1]
        params = [(rest[2 * i], rest[2 * i + 1]) for i in range(n_layers)]

        h = x_ref[...]  # (tile_rows, dim_x) f32

        # Hidden layers (Linear + ReLU).
        for li in range(n_layers - 1):
            w_ref, b_ref = params[li]
            lhs = h.astype(cast_dtype) if do_cast else h
            h = jnp.dot(lhs, w_ref[...], preferred_element_type=jnp.float32) + b_ref[...]
            h = jnp.maximum(h, 0.0)

        # Zero out padded set rows (only traced when N needed sublane padding).
        if n_pad != n_real:
            pos = jax.lax.broadcasted_iota(jnp.int32, (h.shape[0], 1), 0) % n_pad
            h = jnp.where(pos < n_real, h, 0.0)

        # Set-mean BEFORE the last (activation-free) Linear:
        #   mean_N(h @ W + b) == mean_N(h) @ W + b  -> final matmul on sets_per_tile rows.
        hs = h.reshape(sets_per_tile, n_pad, h.shape[-1])
        pooled = jnp.sum(hs, axis=1) * (1.0 / n_real)        # (sets_per_tile, hidden)

        w_ref, b_ref = params[-1]
        lhs = pooled.astype(cast_dtype) if do_cast else pooled
        phi_ref[0] = jnp.dot(lhs, w_ref[...], preferred_element_type=jnp.float32) + b_ref[...]

    return kernel


def _make_next_kernel(n_layers, bn_last, cast_dtype, do_cast):
    """next_net MLP + optional BatchNorm1d (training-mode batch stats, affine=False)."""

    def kernel(phi_ref, *rest):
        o_ref = rest[-1]
        params = [(rest[2 * i], rest[2 * i + 1]) for i in range(n_layers)]

        h = phi_ref[...]  # (B, 128) f32
        for li, (w_ref, b_ref) in enumerate(params):
            lhs = h.astype(cast_dtype) if do_cast else h
            h = jnp.dot(lhs, w_ref[...], preferred_element_type=jnp.float32) + b_ref[...]
            if li < n_layers - 1:
                h = jnp.maximum(h, 0.0)

        if bn_last:
            mu = jnp.mean(h, axis=0, keepdims=True)
            var = jnp.mean((h - mu) ** 2, axis=0, keepdims=True)  # biased variance
            h = (h - mu) * jax.lax.rsqrt(var + BN_EPS)

        o_ref[...] = h

    return kernel


# ----------------------------- host-side wrapper -----------------------------
def _pad_linear(w, b, mxu_dtype, pad_in):
    din, dout = w.shape
    din_p = _round_up(din, LANE) if pad_in else din
    dout_p = _round_up(dout, LANE)
    w_p = jnp.zeros((din_p, dout_p), mxu_dtype).at[:din, :dout].set(w.astype(mxu_dtype))
    b_p = jnp.zeros((1, dout_p), jnp.float32).at[:, :dout].set(
        b.reshape(1, -1).astype(jnp.float32))
    return w_p, b_p


@functools.partial(jax.jit, static_argnames=("bn_last", "target_tile_rows", "mxu_dtype"))
def deepsets_forward(x, feat_params, next_params, bn_last=True,
                     target_tile_rows=4096, mxu_dtype=jnp.bfloat16):
    """x: (B, N, dim_x) float32.  Returns (B, dim_ss) float32."""
    B, N, dim_x = x.shape
    dim_ss = next_params[-1][0].shape[1]
    do_cast = jnp.dtype(mxu_dtype) != jnp.dtype(jnp.float32)

    # Pad the set dim to a sublane multiple; x lane dim stays dim_x (no lane padding).
    n_pad = _round_up(N, SUBLANE)
    ss_pad = _round_up(dim_ss, LANE)

    # cdiv-based tiling of whole sets (independent of B's factorization).
    sets_per_tile = max(1, min(B, target_tile_rows // n_pad))
    if B >= 2:
        # keep >= 2 grid steps so the "parallel" axis can split across both TCs (v7x).
        sets_per_tile = min(sets_per_tile, (B + 1) // 2)
    num_tiles = -(-B // sets_per_tile)
    B_pad = num_tiles * sets_per_tile
    tile_rows = sets_per_tile * n_pad

    xp = x.astype(jnp.float32)
    if B_pad != B or n_pad != N:
        xp = jnp.pad(xp, ((0, B_pad - B), (0, n_pad - N), (0, 0)))
    xf = xp.reshape(B_pad * n_pad, dim_x)

    feat_p = [_pad_linear(w, b, mxu_dtype, pad_in=(li > 0))
              for li, (w, b) in enumerate(feat_params)]
    next_p = [_pad_linear(w, b, mxu_dtype, pad_in=True) for (w, b) in next_params]

    # ---------------- kernel 1: feature net + per-set mean ----------------
    feat_args = []
    in_specs = [pl.BlockSpec((tile_rows, dim_x), lambda i: (i, 0))]   # x: streamed row tiles
    for w, b in feat_p:
        feat_args += [w, b]
        in_specs.append(pl.BlockSpec(w.shape, lambda i: (0, 0)))      # resident weights
        in_specs.append(pl.BlockSpec(b.shape, lambda i: (0, 0)))

    weight_bytes = sum(int(w.size) * w.dtype.itemsize + int(b.size) * 4 for w, b in feat_p)
    flops1 = 0
    for li, (w, _) in enumerate(feat_p):
        rows = B_pad * n_pad if li < len(feat_p) - 1 else B_pad   # pooled before last layer
        flops1 += 2 * rows * int(w.shape[0]) * int(w.shape[1])
    bytes1 = int(xf.size) * 4 + weight_bytes + B_pad * ss_pad * 4

    kernel1 = _make_feature_kernel(len(feat_p), sets_per_tile, n_pad, N, mxu_dtype, do_cast)
    phi = pl.pallas_call(
        kernel1,
        out_shape=jax.ShapeDtypeStruct((num_tiles, sets_per_tile, ss_pad), jnp.float32),
        grid=(num_tiles,),
        in_specs=in_specs,
        out_specs=pl.BlockSpec((1, sets_per_tile, ss_pad), lambda i: (i, 0, 0)),
        compiler_params=pltpu.CompilerParams(
            dimension_semantics=("parallel",),          # megacore sharding on v7x
            vmem_limit_bytes=32 * 1024 * 1024),         # fits v5e/v6e/v7x scoped VMEM
        cost_estimate=pl.CostEstimate(flops=int(flops1), transcendentals=0,
                                      bytes_accessed=int(bytes1)),
    )(xf, *feat_args)
    # Drop the padded sets so kernel 2's BatchNorm only sees the real batch rows.
    phi = phi.reshape(B_pad, ss_pad)[:B]

    # ---------------- kernel 2: next_net + BatchNorm (tiny, single block) ----------------
    next_args = []
    for w, b in next_p:
        next_args += [w, b]

    kernel2 = _make_next_kernel(len(next_p), bn_last, mxu_dtype, do_cast)
    out = pl.pallas_call(
        kernel2,
        out_shape=jax.ShapeDtypeStruct((B, ss_pad), jnp.float32),
        in_specs=[pl.BlockSpec(memory_space=pltpu.MemorySpace.VMEM)] * (1 + len(next_args)),
        out_specs=pl.BlockSpec(memory_space=pltpu.MemorySpace.VMEM),
        compiler_params=pltpu.CompilerParams(vmem_limit_bytes=32 * 1024 * 1024),
    )(phi, *next_args)

    return out[:, :dim_ss]


# ----------------------- parameter init (deterministic) -----------------------
def init_mlp(key, dim_in, dim_out, factor, n_layers):
    """n_layers hidden layers of width `factor`, final Linear(factor, dim_out)."""
    dims = [dim_in] + [factor] * n_layers + [dim_out]
    params = []
    for i in range(len(dims) - 1):
        key, kw, kb = jax.random.split(key, 3)
        lim = 1.0 / float(dims[i]) ** 0.5  # PyTorch nn.Linear default init range
        w = jax.random.uniform(kw, (dims[i], dims[i + 1]), jnp.float32, -lim, lim)
        b = jax.random.uniform(kb, (1, dims[i + 1]), jnp.float32, -lim, lim)
        params.append((w, b))
    return params, key


# ----------------------- pure-JAX reference for validation -----------------------
def reference(x, feat_params, next_params, bn_last=True):
    B, N, dim_x = x.shape
    h = x.reshape(B * N, dim_x)
    for li, (w, b) in enumerate(feat_params):
        h = h @ w + b
        if li < len(feat_params) - 1:
            h = jnp.maximum(h, 0.0)
    phi = h.reshape(B, N, -1).mean(axis=1)
    h2 = phi
    for li, (w, b) in enumerate(next_params):
        h2 = h2 @ w + b
        if li < len(next_params) - 1:
            h2 = jnp.maximum(h2, 0.0)
    if not bn_last:
        return h2
    mu = h2.mean(axis=0, keepdims=True)
    var = ((h2 - mu) ** 2).mean(axis=0, keepdims=True)
    return (h2 - mu) / jnp.sqrt(var + BN_EPS)


if __name__ == "__main__":
    # Small shapes consistent with DeepSets.forward: x is a 3-D set tensor (B, N, dim_x)
    B, N = 2, 8
    dim_x, dim_ss = 4, 8

    key = jax.random.PRNGKey(0)
    key, kx = jax.random.split(key)
    x = jax.random.normal(kx, (B, N, dim_x), dtype=jnp.float32)

    # common_feature_net: MLP(dim=dim_x, z_dim=dim_ss, factor=64, n_layers=3)
    feat_params, key = init_mlp(key, dim_x, dim_ss, factor=64, n_layers=3)
    # next_net: MLP(dim=dim_ss, z_dim=dim_ss, factor=16, n_layers=2)
    next_params, key = init_mlp(key, dim_ss, dim_ss, factor=16, n_layers=2)

    # --- exact-parity path (f32 MXU operands) ---
    out = deepsets_forward(x, feat_params, next_params, bn_last=True, mxu_dtype=jnp.float32)
    jax.block_until_ready(out)
    ref = reference(x, feat_params, next_params, bn_last=True)
    assert out.shape == (B, dim_ss)
    assert jnp.allclose(out, ref, atol=1e-3, rtol=1e-3), "mismatch vs reference (bn_last=True)"

    out_nobn = deepsets_forward(x, feat_params, next_params, bn_last=False,
                                mxu_dtype=jnp.float32)
    jax.block_until_ready(out_nobn)
    ref_nobn = reference(x, feat_params, next_params, bn_last=False)
    assert jnp.allclose(out_nobn, ref_nobn, atol=1e-3, rtol=1e-3), "mismatch (bn_last=False)"

    # --- ragged shapes: N not a multiple of 8, B needing batch padding ---
    B2, N2 = 3, 5
    key, kx2 = jax.random.split(key)
    x2 = jax.random.normal(kx2, (B2, N2, dim_x), dtype=jnp.float32)
    out2 = deepsets_forward(x2, feat_params, next_params, bn_last=True, mxu_dtype=jnp.float32)
    jax.block_until_ready(out2)
    ref2 = reference(x2, feat_params, next_params, bn_last=True)
    assert out2.shape == (B2, dim_ss)
    assert jnp.allclose(out2, ref2, atol=1e-3, rtol=1e-3), "mismatch (ragged B/N)"

    # --- default performance path (bf16 MXU operands, f32 accumulation) ---
    out_bf16 = deepsets_forward(x, feat_params, next_params, bn_last=False)
    jax.block_until_ready(out_bf16)
    assert out_bf16.shape == (B, dim_ss)
    assert jnp.allclose(out_bf16, ref_nobn, atol=5e-2, rtol=5e-2), "bf16 path out of tolerance"

    print("KERNEL_OK")
</pallas_src>

<mosaic_0001>
module attributes {stable_mosaic.version = 11 : i64} {
  func.func @kernel(%arg0: i32, %arg1: memref<8x4xf32, #tpu.memory_space<vmem>>, %arg2: memref<4x128xf32, #tpu.memory_space<vmem>>, %arg3: memref<1x128xf32, #tpu.memory_space<vmem>>, %arg4: memref<128x128xf32, #tpu.memory_space<vmem>>, %arg5: memref<1x128xf32, #tpu.memory_space<vmem>>, %arg6: memref<128x128xf32, #tpu.memory_space<vmem>>, %arg7: memref<1x128xf32, #tpu.memory_space<vmem>>, %arg8: memref<128x128xf32, #tpu.memory_space<vmem>>, %arg9: memref<1x128xf32, #tpu.memory_space<vmem>>, %arg10: memref<1x1x128xf32, #tpu.memory_space<vmem>>) attributes {dimension_semantics = [#tpu.dimension_semantics<parallel>], iteration_bounds = array<i64: 2>, scalar_prefetch = 0 : i64, scratch_operands = 0 : i64, tpu.core_type = #tpu.core_type<tc>, window_params = [{transform_indices = @transform_0, window_bounds = array<i64: 8, 4>}, {pipeline_mode = #tpu.pipeline_mode<synchronous>, transform_indices = @transform_1, window_bounds = array<i64: 4, 128>}, {pipeline_mode = #tpu.pipeline_mode<synchronous>, transform_indices = @transform_2, window_bounds = array<i64: 1, 128>}, {pipeline_mode = #tpu.pipeline_mode<synchronous>, transform_indices = @transform_3, window_bounds = array<i64: 128, 128>}, {pipeline_mode = #tpu.pipeline_mode<synchronous>, transform_indices = @transform_4, window_bounds = array<i64: 1, 128>}, {pipeline_mode = #tpu.pipeline_mode<synchronous>, transform_indices = @transform_5, window_bounds = array<i64: 128, 128>}, {pipeline_mode = #tpu.pipeline_mode<synchronous>, transform_indices = @transform_6, window_bounds = array<i64: 1, 128>}, {pipeline_mode = #tpu.pipeline_mode<synchronous>, transform_indices = @transform_7, window_bounds = array<i64: 128, 128>}, {pipeline_mode = #tpu.pipeline_mode<synchronous>, transform_indices = @transform_8, window_bounds = array<i64: 1, 128>}, {transform_indices = @transform_9, window_bounds = array<i64: 1, 1, 128>}]} {
    %c0 = arith.constant 0 : index
    %c0_0 = arith.constant 0 : index
    %0 = vector.load %arg1[%c0, %c0_0] : memref<8x4xf32, #tpu.memory_space<vmem>>, vector<8x4xf32>
    %c0_1 = arith.constant 0 : index
    %c0_2 = arith.constant 0 : index
    %1 = vector.load %arg2[%c0_1, %c0_2] : memref<4x128xf32, #tpu.memory_space<vmem>>, vector<4x128xf32>
    %cst = arith.constant dense<0.000000e+00> : vector<8x128xf32>
    %2 = tpu.matmul %0, %1, %cst {dimension_numbers = #tpu.dot_dimension_numbers<[1], [0], [0], [1], [0, 0, 1, 1], [], []>} : vector<8x4xf32>, vector<4x128xf32>, vector<8x128xf32> -> vector<8x128xf32>
    %c0_3 = arith.constant 0 : index
    %c0_4 = arith.constant 0 : index
    %3 = vector.load %arg3[%c0_3, %c0_4] : memref<1x128xf32, #tpu.memory_space<vmem>>, vector<1x128xf32>
    %4 = vector.broadcast %3 : vector<1x128xf32> to vector<8x128xf32>
    %5 = arith.addf %2, %4 : vector<8x128xf32>
    %cst_5 = arith.constant 0.000000e+00 : f32
    %6 = vector.broadcast %cst_5 : f32 to vector<8x128xf32>
    %7 = arith.maximumf %5, %6 : vector<8x128xf32>
    %c0_6 = arith.constant 0 : index
    %c0_7 = arith.constant 0 : index
    %8 = vector.load %arg4[%c0_6, %c0_7] : memref<128x128xf32, #tpu.memory_space<vmem>>, vector<128x128xf32>
    %cst_8 = arith.constant dense<0.000000e+00> : vector<8x128xf32>
    %9 = tpu.matmul %7, %8, %cst_8 {dimension_numbers = #tpu.dot_dimension_numbers<[1], [0], [0], [1], [0, 0, 1, 1], [], []>} : vector<8x128xf32>, vector<128x128xf32>, vector<8x128xf32> -> vector<8x128xf32>
    %c0_9 = arith.constant 0 : index
    %c0_10 = arith.constant 0 : index
    %10 = vector.load %arg5[%c0_9, %c0_10] : memref<1x128xf32, #tpu.memory_space<vmem>>, vector<1x128xf32>
    %11 = vector.broadcast %10 : vector<1x128xf32> to vector<8x128xf32>
    %12 = arith.addf %9, %11 : vector<8x128xf32>
    %cst_11 = arith.constant 0.000000e+00 : f32
    %13 = vector.broadcast %cst_11 : f32 to vector<8x128xf32>
    %14 = arith.maximumf %12, %13 : vector<8x128xf32>
    %c0_12 = arith.constant 0 : index
    %c0_13 = arith.constant 0 : index
    %15 = vector.load %arg6[%c0_12, %c0_13] : memref<128x128xf32, #tpu.memory_space<vmem>>, vector<128x128xf32>
    %cst_14 = arith.constant dense<0.000000e+00> : vector<8x128xf32>
    %16 = tpu.matmul %14, %15, %cst_14 {dimension_numbers = #tpu.dot_dimension_numbers<[1], [0], [0], [1], [0, 0, 1, 1], [], []>} : vector<8x128xf32>, vector<128x128xf32>, vector<8x128xf32> -> vector<8x128xf32>
    %c0_15 = arith.constant 0 : index
    %c0_16 = arith.constant 0 : index
    %17 = vector.load %arg7[%c0_15, %c0_16] : memref<1x128xf32, #tpu.memory_space<vmem>>, vector<1x128xf32>
    %18 = vector.broadcast %17 : vector<1x128xf32> to vector<8x128xf32>
    %19 = arith.addf %16, %18 : vector<8x128xf32>
    %cst_17 = arith.constant 0.000000e+00 : f32
    %20 = vector.broadcast %cst_17 : f32 to vector<8x128xf32>
    %21 = arith.maximumf %19, %20 : vector<8x128xf32>
    %22 = vector.shape_cast %21 : vector<8x128xf32> to vector<1x8x128xf32>
    %cst_18 = arith.constant dense<0.000000e+00> : vector<1x128xf32>
    %23 = vector.multi_reduction <add>, %22, %cst_18 [1] : vector<1x8x128xf32> to vector<1x128xf32>
    %cst_19 = arith.constant 1.250000e-01 : f32
    %24 = vector.broadcast %cst_19 : f32 to vector<1x128xf32>
    %25 = arith.mulf %23, %24 : vector<1x128xf32>
    %c0_20 = arith.constant 0 : index
    %c0_21 = arith.constant 0 : index
    %26 = vector.load %arg8[%c0_20, %c0_21] : memref<128x128xf32, #tpu.memory_space<vmem>>, vector<128x128xf32>
    %cst_22 = arith.constant dense<0.000000e+00> : vector<1x128xf32>
    %27 = tpu.matmul %25, %26, %cst_22 {dimension_numbers = #tpu.dot_dimension_numbers<[1], [0], [0], [1], [0, 0, 1, 1], [], []>} : vector<1x128xf32>, vector<128x128xf32>, vector<1x128xf32> -> vector<1x128xf32>
    %c0_23 = arith.constant 0 : index
    %c0_24 = arith.constant 0 : index
    %28 = vector.load %arg9[%c0_23, %c0_24] : memref<1x128xf32, #tpu.memory_space<vmem>>, vector<1x128xf32>
    %29 = arith.addf %27, %28 : vector<1x128xf32>
    %c0_25 = arith.constant 0 : index
    %c0_26 = arith.constant 0 : index
    %c0_27 = arith.constant 0 : index
    %30 = vector.load %arg10[%c0_25, %c0_26, %c0_27] : memref<1x1x128xf32, #tpu.memory_space<vmem>>, vector<1x1x128xf32>
    %31 = vector.shape_cast %30 : vector<1x1x128xf32> to vector<1x128xf32>
    %32 = vector.shape_cast %29 : vector<1x128xf32> to vector<1x1x128xf32>
    tpu.vector_store %arg10[%c0_25, %c0_26, %c0_27], %32 {strides = array<i32>} : memref<1x1x128xf32, #tpu.memory_space<vmem>>, vector<1x1x128xf32>,
    return
  }
  func.func @transform_0(%arg0: i32) -> (i32, i32) {
    %c0_i32 = arith.constant 0 : i32
    %c0_i32_0 = arith.constant 0 : i32
    return %arg0, %c0_i32 : i32, i32
  }
  func.func @transform_1(%arg0: i32) -> (i32, i32) {
    %c0_i32 = arith.constant 0 : i32
    %c0_i32_0 = arith.constant 0 : i32
    %c0_i32_1 = arith.constant 0 : i32
    return %c0_i32, %c0_i32_0 : i32, i32
  }
  func.func @transform_2(%arg0: i32) -> (i32, i32) {
    %c0_i32 = arith.constant 0 : i32
    %c0_i32_0 = arith.constant 0 : i32
    %c0_i32_1 = arith.constant 0 : i32
    return %c0_i32, %c0_i32_0 : i32, i32
  }
  func.func @transform_3(%arg0: i32) -> (i32, i32) {
    %c0_i32 = arith.constant 0 : i32
    %c0_i32_0 = arith.constant 0 : i32
    %c0_i32_1 = arith.constant 0 : i32
    return %c0_i32, %c0_i32_0 : i32, i32
  }
  func.func @transform_4(%arg0: i32) -> (i32, i32) {
    %c0_i32 = arith.constant 0 : i32
    %c0_i32_0 = arith.constant 0 : i32
    %c0_i32_1 = arith.constant 0 : i32
    return %c0_i32, %c0_i32_0 : i32, i32
  }
  func.func @transform_5(%arg0: i32) -> (i32, i32) {
    %c0_i32 = arith.constant 0 : i32
    %c0_i32_0 = arith.constant 0 : i32
    %c0_i32_1 = arith.constant 0 : i32
    return %c0_i32, %c0_i32_0 : i32, i32
  }
  func.func @transform_6(%arg0: i32) -> (i32, i32) {
    %c0_i32 = arith.constant 0 : i32
    %c0_i32_0 = arith.constant 0 : i32
    %c0_i32_1 = arith.constant 0 : i32
    return %c0_i32, %c0_i32_0 : i32, i32
  }
  func.func @transform_7(%arg0: i32) -> (i32, i32) {
    %c0_i32 = arith.constant 0 : i32
    %c0_i32_0 = arith.constant 0 : i32
    %c0_i32_1 = arith.constant 0 : i32
    return %c0_i32, %c0_i32_0 : i32, i32
  }
  func.func @transform_8(%arg0: i32) -> (i32, i32) {
    %c0_i32 = arith.constant 0 : i32
    %c0_i32_0 = arith.constant 0 : i32
    %c0_i32_1 = arith.constant 0 : i32
    return %c0_i32, %c0_i32_0 : i32, i32
  }
  func.func @transform_9(%arg0: i32) -> (i32, i32, i32) {
    %c0_i32 = arith.constant 0 : i32
    %c0_i32_0 = arith.constant 0 : i32
    %c0_i32_1 = arith.constant 0 : i32
    return %arg0, %c0_i32, %c0_i32_0 : i32, i32, i32
  }
}

module attributes {stable_mosaic.version = 11 : i64} {
  func.func @kernel(%arg0: memref<2x128xf32, #tpu.memory_space<vmem>>, %arg1: memref<128x128xf32, #tpu.memory_space<vmem>>, %arg2: memref<1x128xf32, #tpu.memory_space<vmem>>, %arg3: memref<128x128xf32, #tpu.memory_space<vmem>>, %arg4: memref<1x128xf32, #tpu.memory_space<vmem>>, %arg5: memref<128x128xf32, #tpu.memory_space<vmem>>, %arg6: memref<1x128xf32, #tpu.memory_space<vmem>>, %arg7: memref<2x128xf32, #tpu.memory_space<vmem>>) attributes {dimension_semantics = [], scalar_prefetch = 0 : i64, scratch_operands = 0 : i64, tpu.core_type = #tpu.core_type<tc>} {
    %c0 = arith.constant 0 : index
    %c0_0 = arith.constant 0 : index
    %0 = vector.load %arg0[%c0, %c0_0] : memref<2x128xf32, #tpu.memory_space<vmem>>, vector<2x128xf32>
    %c0_1 = arith.constant 0 : index
    %c0_2 = arith.constant 0 : index
    %1 = vector.load %arg1[%c0_1, %c0_2] : memref<128x128xf32, #tpu.memory_space<vmem>>, vector<128x128xf32>
    %cst = arith.constant dense<0.000000e+00> : vector<2x128xf32>
    %2 = tpu.matmul %0, %1, %cst {dimension_numbers = #tpu.dot_dimension_numbers<[1], [0], [0], [1], [0, 0, 1, 1], [], []>} : vector<2x128xf32>, vector<128x128xf32>, vector<2x128xf32> -> vector<2x128xf32>
    %c0_3 = arith.constant 0 : index
    %c0_4 = arith.constant 0 : index
    %3 = vector.load %arg2[%c0_3, %c0_4] : memref<1x128xf32, #tpu.memory_space<vmem>>, vector<1x128xf32>
    %4 = vector.broadcast %3 : vector<1x128xf32> to vector<2x128xf32>
    %5 = arith.addf %2, %4 : vector<2x128xf32>
    %cst_5 = arith.constant 0.000000e+00 : f32
    %6 = vector.broadcast %cst_5 : f32 to vector<2x128xf32>
    %7 = arith.maximumf %5, %6 : vector<2x128xf32>
    %c0_6 = arith.constant 0 : index
    %c0_7 = arith.constant 0 : index
    %8 = vector.load %arg3[%c0_6, %c0_7] : memref<128x128xf32, #tpu.memory_space<vmem>>, vector<128x128xf32>
    %cst_8 = arith.constant dense<0.000000e+00> : vector<2x128xf32>
    %9 = tpu.matmul %7, %8, %cst_8 {dimension_numbers = #tpu.dot_dimension_numbers<[1], [0], [0], [1], [0, 0, 1, 1], [], []>} : vector<2x128xf32>, vector<128x128xf32>, vector<2x128xf32> -> vector<2x128xf32>
    %c0_9 = arith.constant 0 : index
    %c0_10 = arith.constant 0 : index
    %10 = vector.load %arg4[%c0_9, %c0_10] : memref<1x128xf32, #tpu.memory_space<vmem>>, vector<1x128xf32>
    %11 = vector.broadcast %10 : vector<1x128xf32> to vector<2x128xf32>
    %12 = arith.addf %9, %11 : vector<2x128xf32>
    %cst_11 = arith.constant 0.000000e+00 : f32
    %13 = vector.broadcast %cst_11 : f32 to vector<2x128xf32>
    %14 = arith.maximumf %12, %13 : vector<2x128xf32>
    %c0_12 = arith.constant 0 : index
    %c0_13 = arith.constant 0 : index
    %15 = vector.load %arg5[%c0_12, %c0_13] : memref<128x128xf32, #tpu.memory_space<vmem>>, vector<128x128xf32>
    %cst_14 = arith.constant dense<0.000000e+00> : vector<2x128xf32>
    %16 = tpu.matmul %14, %15, %cst_14 {dimension_numbers = #tpu.dot_dimension_numbers<[1], [0], [0], [1], [0, 0, 1, 1], [], []>} : vector<2x128xf32>, vector<128x128xf32>, vector<2x128xf32> -> vector<2x128xf32>
    %c0_15 = arith.constant 0 : index
    %c0_16 = arith.constant 0 : index
    %17 = vector.load %arg6[%c0_15, %c0_16] : memref<1x128xf32, #tpu.memory_space<vmem>>, vector<1x128xf32>
    %18 = vector.broadcast %17 : vector<1x128xf32> to vector<2x128xf32>
    %19 = arith.addf %16, %18 : vector<2x128xf32>
    %cst_17 = arith.constant dense<0.000000e+00> : vector<128xf32>
    %20 = vector.multi_reduction <add>, %19, %cst_17 [0] : vector<2x128xf32> to vector<128xf32>
    %21 = vector.shape_cast %20 : vector<128xf32> to vector<1x128xf32>
    %cst_18 = arith.constant 2.000000e+00 : f32
    %22 = vector.broadcast %cst_18 : f32 to vector<1x128xf32>
    %23 = arith.divf %21, %22 : vector<1x128xf32>
    %24 = vector.broadcast %23 : vector<1x128xf32> to vector<2x128xf32>
    %25 = arith.subf %19, %24 : vector<2x128xf32>
    %26 = arith.mulf %25, %25 : vector<2x128xf32>
    %cst_19 = arith.constant dense<0.000000e+00> : vector<128xf32>
    %27 = vector.multi_reduction <add>, %26, %cst_19 [0] : vector<2x128xf32> to vector<128xf32>
    %28 = vector.shape_cast %27 : vector<128xf32> to vector<1x128xf32>
    %cst_20 = arith.constant 2.000000e+00 : f32
    %29 = vector.broadcast %cst_20 : f32 to vector<1x128xf32>
    %30 = arith.divf %28, %29 : vector<1x128xf32>
    %31 = vector.broadcast %23 : vector<1x128xf32> to vector<2x128xf32>
    %32 = arith.subf %19, %31 : vector<2x128xf32>
    %cst_21 = arith.constant 9.99999974E-6 : f32
    %33 = vector.broadcast %cst_21 : f32 to vector<1x128xf32>
    %34 = arith.addf %30, %33 : vector<1x128xf32>
    %35 = math.rsqrt %34 : vector<1x128xf32>
    %36 = vector.broadcast %35 : vector<1x128xf32> to vector<2x128xf32>
    %37 = arith.mulf %32, %36 : vector<2x128xf32>
    %c0_22 = arith.constant 0 : index
    %c0_23 = arith.constant 0 : index
    %38 = vector.load %arg7[%c0_22, %c0_23] : memref<2x128xf32, #tpu.memory_space<vmem>>, vector<2x128xf32>
    tpu.vector_store %arg7[%c0_22, %c0_23], %37 {strides = array<i32>} : memref<2x128xf32, #tpu.memory_space<vmem>>, vector<2x128xf32>,
    return
  }
}

</mosaic_0001>

<bundles_post_ra>
// kernel: deepsets_forward.3
= control target key start
LH: loop header
LB: loop body
LE: loop exit
PB: predicated region body
PF: predicated region fallthrough
CT: control target
= control target key end

     0   :  { %v533_v1 = vmov 0.0   ;;  %vm534_vm0 = vmmov 0   ;;  %s789_s0 = inlined_call_operand.vmem [shape: f32[2,128], index: 0, kind: input, shape index: {}]   ;;  %s790_s1 = inlined_call_operand.vmem [shape: f32[128,128], index: 1, kind: input, shape index: {}]   ;;  %s791_s2 = inlined_call_operand.vmem [shape: f32[1,128], index: 2, kind: input, shape index: {}]   ;;  %s792_s3 = inlined_call_operand.vmem [shape: f32[128,128], index: 3, kind: input, shape index: {}]   ;;  %s793_s4 = inlined_call_operand.vmem [shape: f32[1,128], index: 4, kind: input, shape index: {}]   ;;  %s794_s5 = inlined_call_operand.vmem [shape: f32[128,128], index: 5, kind: input, shape index: {}]   ;;  %s795_s6 = inlined_call_operand.vmem [shape: f32[1,128], index: 6, kind: input, shape index: {}]   ;;  %s796_s7 = inlined_call_operand.hbm [shape: f32[2,128], index: 7, kind: output, shape index: {}]  }
   0x1   :  { %v43_v0 = vld [vmem:[%s790_s1 + $0x78] sm:$0xff]  ;;  %401 = vmatprep.subr.mxu0 %v533_v1  ;;  %v42_v2 = vld [vmem:[%s790_s1 + $0x70] sm:$0xff]  ;;  %433 = vmatprep.mubr.msk.f32.mxu0 %vm534_vm0, %v533_v1  ;;  %v41_v3 = vld [vmem:[%s790_s1 + $0x68] sm:$0xff] }
   0x2   :  { %402 = vmatpush3.msra.mxu0 %v43_v0  ;;  %436 = vmatprep.subr.mxu1 %v533_v1  ;;  %v40_v4 = vld [vmem:[%s790_s1 + $0x60] sm:$0xff]  ;;  %v137_v5 = vld [vmem:[%s792_s3 + $0x78] sm:$0xff]  ;;  %v136_v6 = vld [vmem:[%s792_s3 + $0x70] sm:$0xff] }
   0x3   :  { %403 = vmatprep.subr.mxu0 %v533_v1  ;;  %468 = vmatprep.mubr.msk.f32.mxu1 %vm534_vm0, %v533_v1  ;;  %v39_v7 = vld [vmem:[%s790_s1 + $0x58] sm:$0xff]  ;;  %v135_v8 = vld [vmem:[%s792_s3 + $0x68] sm:$0xff]  ;;  %v38_v9 = vld [vmem:[%s790_s1 + $0x50] sm:$0xff] }
   0x4   :  { %404 = vmatpush3.msra.mxu0 %v42_v2  ;;  %437 = vmatpush3.msra.mxu1 %v137_v5  ;;  %v134_v10 = vld [vmem:[%s792_s3 + $0x60] sm:$0xff] }
   0x5   :  { %405 = vmatprep.subr.mxu0 %v533_v1  ;;  %438 = vmatprep.subr.mxu1 %v533_v1 }
   0x6   :  { %406 = vmatpush3.msra.mxu0 %v41_v3  ;;  %439 = vmatpush3.msra.mxu1 %v136_v6 }
   0x7   :  { %407 = vmatprep.subr.mxu0 %v533_v1  ;;  %440 = vmatprep.subr.mxu1 %v533_v1 }
   0x8   :  { %408 = vmatpush3.msra.mxu0 %v40_v4  ;;  %441 = vmatpush3.msra.mxu1 %v135_v8 }
   0x9   :  { %409 = vmatprep.subr.mxu0 %v533_v1 }
   0xa   :  { %410 = vmatpush3.msra.mxu0 %v39_v7 }
   0xb   :  { %12 = vsyncpa [#allocation3], 0  ;;  %411 = vmatprep.subr.mxu0 %v533_v1  ;;  %v37_v11 = vld [vmem:[%s790_s1 + $0x48] sm:$0xff]  ;;  %442 = vmatprep.subr.mxu1 %v533_v1  ;;  %v133_v12 = vld [vmem:[%s792_s3 + $0x58] sm:$0xff]  ;;  %vm309_vm1 = vcmask 1041408  }
   0xc   :  { %412 = vmatpush3.msra.mxu0 %v38_v9  ;;  %443 = vmatpush3.msra.mxu1 %v134_v10  ;;  %v36_v13 = vld [vmem:[%s790_s1 + $0x40] sm:$0xff]  ;;  %v132_v14 = vld [vmem:[%s792_s3 + $0x50] sm:$0xff]  ;;  %v35_v15 = vld [vmem:[%s790_s1 + $0x38] sm:$0xff] }
   0xd   :  { %413 = vmatprep.subr.mxu0 %v533_v1  ;;  %444 = vmatprep.subr.mxu1 %v533_v1  ;;  %v131_v16 = vld [vmem:[%s792_s3 + $0x48] sm:$0xff]  ;;  %v34_v17 = vld [vmem:[%s790_s1 + $0x30] sm:$0xff]  ;;  %v130_v18 = vld [vmem:[%s792_s3 + $0x40] sm:$0xff] }
   0xe   :  { %414 = vmatpush3.msra.mxu0 %v37_v11  ;;  %445 = vmatpush3.msra.mxu1 %v133_v12  ;;  %v33_v19 = vld [vmem:[%s790_s1 + $0x28] sm:$0xff]  ;;  %v129_v20 = vld [vmem:[%s792_s3 + $0x38] sm:$0xff]  ;;  %v32_v21 = vld [vmem:[%s790_s1 + $0x20] sm:$0xff] }
   0xf   :  { %415 = vmatprep.subr.mxu0 %v533_v1  ;;  %446 = vmatprep.subr.mxu1 %v533_v1  ;;  %v128_v22 = vld [vmem:[%s792_s3 + $0x30] sm:$0xff]  ;;  %v31_v23 = vld [vmem:[%s790_s1 + $0x18] sm:$0xff]  ;;  %v127_v24 = vld [vmem:[%s792_s3 + $0x28] sm:$0xff] }
  0x10   :  { %416 = vmatpush3.msra.mxu0 %v36_v13  ;;  %447 = vmatpush3.msra.mxu1 %v132_v14  ;;  %v30_v25 = vld [vmem:[%s790_s1 + $0x10] sm:$0xff]  ;;  %v126_v26 = vld [vmem:[%s792_s3 + $0x20] sm:$0xff]  ;;  %v29_v27 = vld [vmem:[%s790_s1 + $0x8] sm:$0xff] }
  0x11   :  { %417 = vmatprep.subr.mxu0 %v533_v1  ;;  %448 = vmatprep.subr.mxu1 %v533_v1  ;;  %v125_v28 = vld [vmem:[%s792_s3 + $0x18] sm:$0xff]  ;;  %v28_v29 = vld [vmem:[%s790_s1] sm:$0xff]  ;;  %v124_v31 = vld [vmem:[%s792_s3 + $0x10] sm:$0xff] }
  0x12   :  { %418 = vmatpush3.msra.mxu0 %v35_v15  ;;  %449 = vmatpush3.msra.mxu1 %v131_v16  ;;  %v27_v30 = vld [vmem:[%s789_s0] sm:$0x3]  ;;  %v123_v32 = vld [vmem:[%s792_s3 + $0x8] sm:$0xff]  ;;  %v231_v34 = vld [vmem:[%s794_s5 + $0x78] sm:$0xff] }
  0x13   :  { %419 = vmatprep.subr.mxu0 %v533_v1  ;;  %450 = vmatprep.subr.mxu1 %v533_v1  ;;  %v122_v33 = vld [vmem:[%s792_s3] sm:$0xff]  ;;  %v230_v35 = vld [vmem:[%s794_s5 + $0x70] sm:$0xff]  ;;  %v229_v36 = vld [vmem:[%s794_s5 + $0x68] sm:$0xff] }
  0x14   :  { %420 = vmatpush3.msra.mxu0 %v34_v17  ;;  %451 = vmatpush3.msra.mxu1 %v130_v18  ;;  %v228_v37 = vld [vmem:[%s794_s5 + $0x60] sm:$0xff]  ;;  %v227_v38 = vld [vmem:[%s794_s5 + $0x58] sm:$0xff]  ;;  %v226_v39 = vld [vmem:[%s794_s5 + $0x50] sm:$0xff] }
  0x15   :  { %421 = vmatprep.subr.mxu0 %v533_v1  ;;  %452 = vmatprep.subr.mxu1 %v533_v1  ;;  %v225_v40 = vld [vmem:[%s794_s5 + $0x48] sm:$0xff]  ;;  %v224_v41 = vld [vmem:[%s794_s5 + $0x40] sm:$0xff]  ;;  %v223_v42 = vld [vmem:[%s794_s5 + $0x38] sm:$0xff] }
  0x16   :  { %422 = vmatpush3.msra.mxu0 %v33_v19  ;;  %453 = vmatpush3.msra.mxu1 %v129_v20  ;;  %v222_v43 = vld [vmem:[%s794_s5 + $0x30] sm:$0xff]  ;;  %v221_v44 = vld [vmem:[%s794_s5 + $0x28] sm:$0xff]  ;;  %v220_v45 = vld [vmem:[%s794_s5 + $0x20] sm:$0xff] }
  0x17   :  { %423 = vmatprep.subr.mxu0 %v533_v1  ;;  %454 = vmatprep.subr.mxu1 %v533_v1  ;;  %v219_v46 = vld [vmem:[%s794_s5 + $0x18] sm:$0xff]  ;;  %v347_v47 = vld [vmem:[%s791_s2] ss:$0 sm:$0xff]  ;;  %v218_v52 = vld [vmem:[%s794_s5 + $0x10] sm:$0xff] }
  0x18   :  { %424 = vmatpush3.msra.mxu0 %v32_v21  ;;  %455 = vmatpush3.msra.mxu1 %v128_v22  ;;  %v217_v53 = vld [vmem:[%s794_s5 + $0x8] sm:$0xff]  ;;  %v216_v54 = vld [vmem:[%s794_s5] sm:$0xff] }
  0x19   :  { %425 = vmatprep.subr.mxu0 %v533_v1  ;;  %456 = vmatprep.subr.mxu1 %v533_v1  ;;  %v348_v55 = vld [vmem:[%s793_s4] ss:$0 sm:$0xff]  ;;  %s535_s4 = smov [#allocation2]  }
  0x1a   :  { %426 = vmatpush3.msra.mxu0 %v31_v23  ;;  %457 = vmatpush3.msra.mxu1 %v127_v24  ;;  %v349_v60 = vld [vmem:[%s795_s6] ss:$0 sm:$0xff]  ;;  %s339_s5 = sshll.u32 %s535_s4, 4  ;;  %s340_s5 = int_to_ptr.vmem [resolvable:$true] %s339_s5 }
  0x1b   :  { %427 = vmatprep.subr.mxu0 %v533_v1  ;;  %458 = vmatprep.subr.mxu1 %v533_v1  ;;  %s511_s6 = scalar_lea.vmem %s340_s5, 32  ;;  %p516_p1 = scmp.lt.s32.totalorder %s340_s5, %s340_s5 }
  0x1c   :  { %428 = vmatpush3.msra.mxu0 %v30_v25  ;;  %459 = vmatpush3.msra.mxu1 %v126_v26  ;;  %p512_p0 = scmp.ne.s32.totalorder %s340_s5, %s511_s6  ;;  %p517_p2 = scmp.lt.s32.totalorder %s511_s6, %s511_s6 }
  0x1d   :  { %429 = vmatprep.subr.mxu0 %v533_v1  ;;  %460 = vmatprep.subr.mxu1 %v533_v1 }
  0x1e   :  { %430 = vmatpush3.msra.mxu0 %v29_v27  ;;  %461 = vmatpush3.msra.mxu1 %v125_v28  ;;  %p518_p3 = por %p517_p2, %p516_p1 }
  0x1f   :  { %431 = vmatprep.subr.mxu0 %v533_v1  ;;  %462 = vmatprep.subr.mxu1 %v533_v1 }
  0x20   :  { %432 = vmatpush3.msra.mxu0 %v28_v29  ;;  %463 = vmatpush3.msra.mxu1 %v124_v31  ;;  %p519_p4 = pnand %p518_p3, %p512_p0 }
  0x21   :  { %434 = vmatmul.mubr.f32.vlgmr.msra.gmra.mxu0 %v27_v30  ;;  %471 = vmatprep.subr.mxu0 %v533_v1 }
  0x22   :  { %503 = vmatprep.mubr.msk.f32.mxu0 %vm534_vm0, %v533_v1  ;;  %464 = vmatprep.subr.mxu1 %v533_v1 }
  0x23   :  { %465 = vmatpush3.msra.mxu1 %v123_v32  ;;  %472 = vmatpush3.msra.mxu0 %v231_v34 }
  0x24   :  { %466 = vmatprep.subr.mxu1 %v533_v1  ;;  %473 = vmatprep.subr.mxu0 %v533_v1 }
  0x25   :  { %467 = vmatpush3.msra.mxu1 %v122_v33  ;;  %474 = vmatpush3.msra.mxu0 %v230_v35 }
  0x26   :  { %475 = vmatprep.subr.mxu0 %v533_v1 }
  0x27   :  { %476 = vmatpush3.msra.mxu0 %v229_v36 }
  0x28   :  { %477 = vmatprep.subr.mxu0 %v533_v1 }
  0x29   :  { %478 = vmatpush3.msra.mxu0 %v228_v37 }
  0x2a   :  { %479 = vmatprep.subr.mxu0 %v533_v1 }
  0x2b   :  { %480 = vmatpush3.msra.mxu0 %v227_v38 }
  0x2c   :  { %481 = vmatprep.subr.mxu0 %v533_v1 }
  0x2d   :  { %482 = vmatpush3.msra.mxu0 %v226_v39 }
  0x2e   :  { %483 = vmatprep.subr.mxu0 %v533_v1 }
  0x2f   :  { %484 = vmatpush3.msra.mxu0 %v225_v40 }
  0x30   :  { %485 = vmatprep.subr.mxu0 %v533_v1 }
  0x31   :  { %486 = vmatpush3.msra.mxu0 %v224_v41 }
  0x32   :  { %487 = vmatprep.subr.mxu0 %v533_v1 }
  0x33   :  { %488 = vmatpush3.msra.mxu0 %v223_v42 }
  0x34   :  { %489 = vmatprep.subr.mxu0 %v533_v1 }
  0x35   :  { %490 = vmatpush3.msra.mxu0 %v222_v43 }
  0x36   :  { %491 = vmatprep.subr.mxu0 %v533_v1 }
  0x37   :  { %492 = vmatpush3.msra.mxu0 %v221_v44 }
  0x38   :  { %493 = vmatprep.subr.mxu0 %v533_v1 }
  0x39   :  { %494 = vmatpush3.msra.mxu0 %v220_v45 }
  0x3a   :  { %495 = vmatprep.subr.mxu0 %v533_v1 }
  0x3b   :  { %496 = vmatpush3.msra.mxu0 %v219_v46 }
  0x3c   :  { %497 = vmatprep.subr.mxu0 %v533_v1 }
  0x3d   :  { %498 = vmatpush3.msra.mxu0 %v218_v52 }
  0x3e   :  { %499 = vmatprep.subr.mxu0 %v533_v1 }
  0x3f   :  { %500 = vmatpush3.msra.mxu0 %v217_v53 }
  0x40   :  { %501 = vmatprep.subr.mxu0 %v533_v1 }
  0x41   :  { %502 = vmatpush3.msra.mxu0 %v216_v54 }
  0xe1   :  { %v117_v48 = vpop.f32.mrf.mxu0 }
  0xe2   :  { %v118_v49 = vadd.f32 %v347_v47, %v117_v48 }
  0xe3   :  { %v435_v50 = vpop.f32.mrf.mxu0 }
  0xe4   :  { %v121_v51 = vmax.f32 %v118_v49, 0.0 }
  0xe6   :  { %469 = vmatmul.mubr.f32.vlgmr.msra.gmra.mxu1 %v121_v51 }
 0x1a6   :  { %v211_v56 = vpop.f32.mrf.mxu1 }
 0x1a7   :  { %v212_v57 = vadd.f32 %v348_v55, %v211_v56 }
 0x1a8   :  { %v470_v58 = vpop.f32.mrf.mxu1 }
 0x1a9   :  { %v215_v59 = vmax.f32 %v212_v57, 0.0 }
 0x1ab   :  { %504 = vmatmul.mubr.f32.vlgmr.msra.gmra.mxu0 %v215_v59 }
 0x26b   :  { %v305_v61 = vpop.f32.mrf.mxu0 }
 0x26c   :  { %v306_v62 = vadd.f32 %v349_v60, %v305_v61 }
 0x26d   :  { %v505_v63 = vpop.f32.mrf.mxu0 }
 0x26e   :  { %v310_v0 = vsel %vm309_vm1, %v306_v62, 0.0 }
 0x26f   :  { %v311_v1 = vrot.slane %v310_v0, 4 }
 0x271   :  { %v312_v2 = vadd.f32 %v311_v1, %v310_v0 }
 0x273   :  { %v313_v3 = vrot.slane %v312_v2, 2 }
 0x275   :  { %v314_v4 = vadd.f32 %v313_v3, %v312_v2 }
 0x277   :  { %v315_v5 = vrot.slane %v314_v4, 1 }
 0x279   :  { %v316_v6 = vadd.f32 %v315_v5, %v314_v4 }
 0x27b   :  { %v318_v7 = vmul.f32 0.5, %v316_v6 }
 0x27d   :  { %v319_v8 = vsub.f32 %v306_v62, %v318_v7 }
 0x27f   :  { %v320_v9 = vmul.f32 %v319_v8, %v319_v8 }
 0x281   :  { %v321_v10 = vsel %vm309_vm1, %v320_v9, 0.0 }
 0x282   :  { %v322_v11 = vrot.slane %v321_v10, 4 }
 0x284   :  { %v323_v12 = vadd.f32 %v322_v11, %v321_v10 }
 0x286   :  { %v324_v13 = vrot.slane %v323_v12, 2 }
 0x288   :  { %v325_v14 = vadd.f32 %v324_v13, %v323_v12 }
 0x28a   :  { %v326_v15 = vrot.slane %v325_v14, 1 }
 0x28c   :  { %v327_v16 = vadd.f32 %v326_v15, %v325_v14 }
 0x28e   :  { %v328_v17 = vmul.f32 0.5, %v327_v16 }
 0x290   :  { %v329_v18 = vadd.f32 1e-05, %v328_v17 }
 0x292   :  { %509 = vrsqrt.f32 %v329_v18 }
 0x29f   :  { %v510_v19 = vpop.eup %509 }
 0x2a0   :  { %v331_v20 = vmul.f32 %v510_v19, %v319_v8 }
 0x2a2   :  { %332 = vst [vmem:[#allocation2] sm:$0x3] %v331_v20 }
 0x2a3   :  { %522 = shalt.err (!%p519_p4)
}
 0x2a4   :  { %342 = dma.vmem_to_hbm [thread:$0]  %s340_s5, 32, %s796_s7, [#allocation3]  }
 0x2a5   :  { %531 = dma.done.wait [#allocation3], 32  }
 0x2a6   :  { %532 = vsyncadd [#allocation3], 4294967264 }
 0x2a7   :  { %346 = vsyncpa [#allocation3], 1 }

// kernel: deepsets_forward.2
= control target key start
LH: loop header
LB: loop body
LE: loop exit
PB: predicated region body
PF: predicated region fallthrough
CT: control target
= control target key end

     0   :  { %s990_s30 = smov 0   ;;  %s1227_s0 = inlined_call_operand.vmem [shape: f32[16,4], index: 0, kind: input, shape index: {}]   ;;  %s1228_s1 = inlined_call_operand.vmem [shape: f32[4,128], index: 1, kind: input, shape index: {}]   ;;  %s1229_s2 = inlined_call_operand.vmem [shape: f32[1,128], index: 2, kind: input, shape index: {}]   ;;  %s1230_s3 = inlined_call_operand.vmem [shape: f32[128,128], index: 3, kind: input, shape index: {}]   ;;  %s1231_s4 = inlined_call_operand.vmem [shape: f32[1,128], index: 4, kind: input, shape index: {}]   ;;  %s1232_s5 = inlined_call_operand.vmem [shape: f32[128,128], index: 5, kind: input, shape index: {}]   ;;  %s1233_s6 = inlined_call_operand.vmem [shape: f32[1,128], index: 6, kind: input, shape index: {}]   ;;  %s1234_s7 = inlined_call_operand.vmem [shape: f32[128,128], index: 7, kind: input, shape index: {}]   ;;  %s1235_s8 = inlined_call_operand.vmem [shape: f32[1,128], index: 8, kind: input, shape index: {}]   ;;  %s1236_s9 = inlined_call_operand.vmem [shape: f32[2,1,128], index: 9, kind: output, shape index: {}]  }
   0x1 LB: > { %s744_s10 = sadd.s32 4294967295, %s936_s30   ;;  %p748_p0 = scmp.ge.s32.totalorder %s936_s30, 1  ;;  %s936_s30 = sphi %s990_s30, %s19_s30  }
   0x2   : > { %p286_p1 = scmp.lt.s32.totalorder %s936_s30, 3 }
   0x4   : > { %p287_p2 = pnand %p748_p0, %p286_p1 }
   0x5   : > { %p319_p3 = scmp.lt.s32.totalorder (!%p287_p2), %s744_s10, 1 }
   0x6   : > { %290 = sbr.rel (%p287_p2) target bundleno = 817 (0x331), region = 56 }
   0xb   : > { %v327_v0 = vld [vmem:[%s1228_s1] sm:$0xf]  ;;  %vm339_vm0 = vcmask 1043456   ;;  %v938_v1 = vmov 0.0   ;;  %vm939_vm1 = vmmov 0   ;;  %v429_v2 = vld [vmem:[%s1230_s3 + $0x78] sm:$0xff] }
   0xc   : > { %810 = vmatprep.subr.mxu0 %v938_v1  ;;  %812 = vmatprep.mubr.msk.f32.mxu0 %vm939_vm1, %v938_v1  ;;  %s1238_s10 = smov (!%p319_p3, %s744_s10), 1  ;;  %v428_v3 = vld [vmem:[%s1230_s3 + $0x70] sm:$0xff]  ;;  %vm335_vm2 = vcmask 31744   ;;  %v427_v4 = vld [vmem:[%s1230_s3 + $0x68] sm:$0xff]  ;;  %v426_v6 = vld [vmem:[%s1230_s3 + $0x60] sm:$0xff] }
   0xd   : > { %811 = vmatpush3.msk.msra.mxu0 %vm339_vm0, %v327_v0  ;;  %815 = vmatprep.subr.mxu1 %v938_v1  ;;  %s749_s17 = sshll.u32 %s1238_s10, 3  ;;  %v425_v7 = vld [vmem:[%s1230_s3 + $0x58] sm:$0xff]  ;;  %v424_v8 = vld [vmem:[%s1230_s3 + $0x50] sm:$0xff]  ;;  %v423_v9 = vld [vmem:[%s1230_s3 + $0x48] sm:$0xff]  ;;  %s325_s28 = scalar_lea.vmem %s1236_s9, %s1238_s10 }
   0xe   : > { %816 = vmatpush3.msra.mxu1 %v429_v2  ;;  %847 = vmatprep.mubr.msk.f32.mxu1 %vm939_vm1, %v938_v1  ;;  %s322_s22 = scalar_lea.vmem %s1227_s0, %s749_s17  ;;  %v422_v10 = vld [vmem:[%s1230_s3 + $0x40] sm:$0xff]  ;;  %v421_v11 = vld [vmem:[%s1230_s3 + $0x38] sm:$0xff]  ;;  %v420_v12 = vld [vmem:[%s1230_s3 + $0x30] sm:$0xff] }
   0xf   : > { %817 = vmatprep.subr.mxu1 %v938_v1  ;;  %850 = vmatprep.subr.mxu0 %v938_v1  ;;  %v326_v5 = vld [vmem:[%s322_s22] sm:$0xff]  ;;  %v419_v13 = vld [vmem:[%s1230_s3 + $0x28] sm:$0xff]  ;;  %v417_v15 = vld [vmem:[%s1230_s3 + $0x18] sm:$0xff] }
  0x10   : > { %818 = vmatpush3.msra.mxu1 %v428_v3  ;;  %813 = vmatmul.mubr.msk.f32.vlgmr.msra.gmra.mxu0 %vm335_vm2, %v326_v5  ;;  %v418_v14 = vld [vmem:[%s1230_s3 + $0x20] sm:$0xff]  ;;  %v416_v16 = vld [vmem:[%s1230_s3 + $0x10] sm:$0xff]  ;;  %v415_v17 = vld [vmem:[%s1230_s3 + $0x8] sm:$0xff] }
  0x11   : > { %819 = vmatprep.subr.mxu1 %v938_v1  ;;  %882 = vmatprep.mubr.msk.f32.mxu0 %vm939_vm1, %v938_v1  ;;  %v414_v18 = vld [vmem:[%s1230_s3] sm:$0xff]  ;;  %v523_v19 = vld [vmem:[%s1232_s5 + $0x78] sm:$0xff]  ;;  %v522_v20 = vld [vmem:[%s1232_s5 + $0x70] sm:$0xff] }
  0x12   : > { %820 = vmatpush3.msra.mxu1 %v427_v4  ;;  %851 = vmatpush3.msra.mxu0 %v523_v19  ;;  %v521_v21 = vld [vmem:[%s1232_s5 + $0x68] sm:$0xff]  ;;  %v520_v22 = vld [vmem:[%s1232_s5 + $0x60] sm:$0xff]  ;;  %v519_v23 = vld [vmem:[%s1232_s5 + $0x58] sm:$0xff] }
  0x13   : > { %821 = vmatprep.subr.mxu1 %v938_v1  ;;  %852 = vmatprep.subr.mxu0 %v938_v1  ;;  %v518_v24 = vld [vmem:[%s1232_s5 + $0x50] sm:$0xff]  ;;  %v517_v25 = vld [vmem:[%s1232_s5 + $0x48] sm:$0xff]  ;;  %v516_v26 = vld [vmem:[%s1232_s5 + $0x40] sm:$0xff] }
  0x14   : > { %822 = vmatpush3.msra.mxu1 %v426_v6  ;;  %853 = vmatpush3.msra.mxu0 %v522_v20  ;;  %v515_v27 = vld [vmem:[%s1232_s5 + $0x38] sm:$0xff]  ;;  %v514_v28 = vld [vmem:[%s1232_s5 + $0x30] sm:$0xff]  ;;  %v513_v29 = vld [vmem:[%s1232_s5 + $0x28] sm:$0xff] }
  0x15   : > { %823 = vmatprep.subr.mxu1 %v938_v1  ;;  %854 = vmatprep.subr.mxu0 %v938_v1  ;;  %v512_v30 = vld [vmem:[%s1232_s5 + $0x20] sm:$0xff]  ;;  %v511_v31 = vld [vmem:[%s1232_s5 + $0x18] sm:$0xff]  ;;  %v510_v37 = vld [vmem:[%s1232_s5 + $0x10] sm:$0xff] }
  0x16   : > { %824 = vmatpush3.msra.mxu1 %v425_v7  ;;  %855 = vmatpush3.msra.mxu0 %v521_v21  ;;  %v750_v32 = vld [vmem:[%s1229_s2] ss:$0 sm:$0xff]  ;;  %v509_v38 = vld [vmem:[%s1232_s5 + $0x8] sm:$0xff]  ;;  %v624_v40 = vld [vmem:[%s1234_s7 + $0x78] sm:$0xff] }
  0x17   : > { %825 = vmatprep.subr.mxu1 %v938_v1  ;;  %856 = vmatprep.subr.mxu0 %v938_v1  ;;  %v508_v39 = vld [vmem:[%s1232_s5] sm:$0xff]  ;;  %v623_v41 = vld [vmem:[%s1234_s7 + $0x70] sm:$0xff]  ;;  %v622_v42 = vld [vmem:[%s1234_s7 + $0x68] sm:$0xff] }
  0x18   : > { %826 = vmatpush3.msra.mxu1 %v424_v8  ;;  %857 = vmatpush3.msra.mxu0 %v520_v22  ;;  %v621_v43 = vld [vmem:[%s1234_s7 + $0x60] sm:$0xff]  ;;  %v620_v44 = vld [vmem:[%s1234_s7 + $0x58] sm:$0xff]  ;;  %v619_v45 = vld [vmem:[%s1234_s7 + $0x50] sm:$0xff] }
  0x19   : > { %827 = vmatprep.subr.mxu1 %v938_v1  ;;  %858 = vmatprep.subr.mxu0 %v938_v1  ;;  %v753_v46 = vld [vmem:[%s1231_s4] ss:$0 sm:$0xff]  ;;  %v618_v51 = vld [vmem:[%s1234_s7 + $0x48] sm:$0xff]  ;;  %v616_v53 = vld [vmem:[%s1234_s7 + $0x38] sm:$0xff] }
  0x1a   : > { %828 = vmatpush3.msra.mxu1 %v423_v9  ;;  %859 = vmatpush3.msra.mxu0 %v519_v23  ;;  %v617_v52 = vld [vmem:[%s1234_s7 + $0x40] sm:$0xff]  ;;  %v615_v54 = vld [vmem:[%s1234_s7 + $0x30] sm:$0xff]  ;;  %v614_v55 = vld [vmem:[%s1234_s7 + $0x28] sm:$0xff] }
  0x1b   : > { %829 = vmatprep.subr.mxu1 %v938_v1  ;;  %860 = vmatprep.subr.mxu0 %v938_v1  ;;  %v613_v56 = vld [vmem:[%s1234_s7 + $0x20] sm:$0xff]  ;;  %v612_v57 = vld [vmem:[%s1234_s7 + $0x18] sm:$0xff]  ;;  %v611_v58 = vld [vmem:[%s1234_s7 + $0x10] sm:$0xff] }
  0x1c   : > { %830 = vmatpush3.msra.mxu1 %v422_v10  ;;  %861 = vmatpush3.msra.mxu0 %v518_v24  ;;  %v610_v59 = vld [vmem:[%s1234_s7 + $0x8] sm:$0xff]  ;;  %v609_v60 = vld [vmem:[%s1234_s7] sm:$0xff] }
  0x1d   : > { %831 = vmatprep.subr.mxu1 %v938_v1  ;;  %862 = vmatprep.subr.mxu0 %v938_v1  ;;  %v754_v61 = vld [vmem:[%s1233_s6] ss:$0 sm:$0xff] }
  0x1e   : > { %832 = vmatpush3.msra.mxu1 %v421_v11  ;;  %863 = vmatpush3.msra.mxu0 %v517_v25 }
  0x1f   : > { %833 = vmatprep.subr.mxu1 %v938_v1  ;;  %864 = vmatprep.subr.mxu0 %v938_v1 }
  0x20   : > { %834 = vmatpush3.msra.mxu1 %v420_v12  ;;  %865 = vmatpush3.msra.mxu0 %v516_v26 }
  0x21   : > { %835 = vmatprep.subr.mxu1 %v938_v1  ;;  %866 = vmatprep.subr.mxu0 %v938_v1 }
  0x22   : > { %836 = vmatpush3.msra.mxu1 %v419_v13  ;;  %867 = vmatpush3.msra.mxu0 %v515_v27 }
  0x23   : > { %837 = vmatprep.subr.mxu1 %v938_v1  ;;  %868 = vmatprep.subr.mxu0 %v938_v1 }
  0x24   : > { %838 = vmatpush3.msra.mxu1 %v418_v14  ;;  %869 = vmatpush3.msra.mxu0 %v514_v28 }
  0x25   : > { %839 = vmatprep.subr.mxu1 %v938_v1  ;;  %870 = vmatprep.subr.mxu0 %v938_v1 }
  0x26   : > { %840 = vmatpush3.msra.mxu1 %v417_v15  ;;  %871 = vmatpush3.msra.mxu0 %v513_v29 }
  0x27   : > { %841 = vmatprep.subr.mxu1 %v938_v1  ;;  %872 = vmatprep.subr.mxu0 %v938_v1 }
  0x28   : > { %842 = vmatpush3.msra.mxu1 %v416_v16  ;;  %873 = vmatpush3.msra.mxu0 %v512_v30 }
  0x29   : > { %843 = vmatprep.subr.mxu1 %v938_v1  ;;  %874 = vmatprep.subr.mxu0 %v938_v1 }
  0x2a   : > { %844 = vmatpush3.msra.mxu1 %v415_v17  ;;  %875 = vmatpush3.msra.mxu0 %v511_v31 }
  0x2b   : > { %845 = vmatprep.subr.mxu1 %v938_v1  ;;  %876 = vmatprep.subr.mxu0 %v938_v1 }
  0x2c   : > { %846 = vmatpush3.msra.mxu1 %v414_v18  ;;  %877 = vmatpush3.msra.mxu0 %v510_v37 }
  0x2d   : > { %885 = vmatprep.subr.mxu1 %v938_v1  ;;  %878 = vmatprep.subr.mxu0 %v938_v1 }
  0x2e   : > { %879 = vmatpush3.msra.mxu0 %v509_v38 }
  0x2f   : > { %880 = vmatprep.subr.mxu0 %v938_v1 }
  0x30   : > { %881 = vmatpush3.msra.mxu0 %v508_v39 }
  0xd0   : > { %v409_v33 = vpop.f32.mrf.mxu0 }
  0xd1   : > { %v410_v34 = vadd.f32 %v750_v32, %v409_v33 }
  0xd2   : > { %v814_v35 = vpop.f32.mrf.mxu0 }
  0xd3   : > { %v413_v36 = vmax.f32 %v410_v34, 0.0 }
  0xd5   : > { %848 = vmatmul.mubr.f32.vlgmr.msra.gmra.mxu1 %v413_v36 }
  0xd6   : > { %917 = vmatprep.mubr.msk.f32.mxu1 %vm939_vm1, %v938_v1  ;;  %886 = vmatpush3.msra.mxu1 %v624_v40 }
  0xd7   : > { %887 = vmatprep.subr.mxu1 %v938_v1 }
  0xd8   : > { %888 = vmatpush3.msra.mxu1 %v623_v41 }
  0xd9   : > { %889 = vmatprep.subr.mxu1 %v938_v1 }
  0xda   : > { %890 = vmatpush3.msra.mxu1 %v622_v42 }
  0xdb   : > { %891 = vmatprep.subr.mxu1 %v938_v1 }
  0xdc   : > { %892 = vmatpush3.msra.mxu1 %v621_v43 }
  0xdd   : > { %893 = vmatprep.subr.mxu1 %v938_v1 }
  0xde   : > { %894 = vmatpush3.msra.mxu1 %v620_v44 }
  0xdf   : > { %895 = vmatprep.subr.mxu1 %v938_v1 }
  0xe0   : > { %896 = vmatpush3.msra.mxu1 %v619_v45 }
  0xe1   : > { %897 = vmatprep.subr.mxu1 %v938_v1 }
  0xe2   : > { %898 = vmatpush3.msra.mxu1 %v618_v51 }
  0xe3   : > { %899 = vmatprep.subr.mxu1 %v938_v1 }
  0xe4   : > { %900 = vmatpush3.msra.mxu1 %v617_v52 }
  0xe5   : > { %901 = vmatprep.subr.mxu1 %v938_v1 }
  0xe6   : > { %902 = vmatpush3.msra.mxu1 %v616_v53 }
  0xe7   : > { %903 = vmatprep.subr.mxu1 %v938_v1 }
  0xe8   : > { %904 = vmatpush3.msra.mxu1 %v615_v54 }
  0xe9   : > { %905 = vmatprep.subr.mxu1 %v938_v1 }
  0xea   : > { %906 = vmatpush3.msra.mxu1 %v614_v55 }
  0xeb   : > { %907 = vmatprep.subr.mxu1 %v938_v1 }
  0xec   : > { %908 = vmatpush3.msra.mxu1 %v613_v56 }
  0xed   : > { %909 = vmatprep.subr.mxu1 %v938_v1 }
  0xee   : > { %910 = vmatpush3.msra.mxu1 %v612_v57 }
  0xef   : > { %911 = vmatprep.subr.mxu1 %v938_v1 }
  0xf0   : > { %912 = vmatpush3.msra.mxu1 %v611_v58 }
  0xf1   : > { %913 = vmatprep.subr.mxu1 %v938_v1 }
  0xf2   : > { %914 = vmatpush3.msra.mxu1 %v610_v59 }
  0xf3   : > { %915 = vmatprep.subr.mxu1 %v938_v1  ;;  %v625_v1 = vld [vmem:[%s1235_s8] sm:$0x1] }
  0xf4   : > { %916 = vmatpush3.msra.mxu1 %v609_v60 }
 0x195   : > { %v503_v47 = vpop.f32.mrf.mxu1 }
 0x196   : > { %v504_v48 = vadd.f32 %v753_v46, %v503_v47 }
 0x197   : > { %v849_v49 = vpop.f32.mrf.mxu1 }
 0x198   : > { %v507_v50 = vmax.f32 %v504_v48, 0.0 }
 0x19a   : > { %883 = vmatmul.mubr.f32.vlgmr.msra.gmra.mxu0 %v507_v50 }
 0x25a   : > { %v597_v62 = vpop.f32.mrf.mxu0 }
 0x25b   : > { %v598_v63 = vadd.f32 %v754_v61, %v597_v62 }
 0x25c   : > { %v884_v0 = vpop.f32.mrf.mxu0 }
 0x25d   : > { %v601_v2 = vmax.f32 %v598_v63, 0.0 }
 0x25f   : > { %v602_v3 = vrot.slane %v601_v2, 4 }
 0x261   : > { %v603_v4 = vadd.f32 %v602_v3, %v601_v2 }
 0x263   : > { %v604_v5 = vrot.slane %v603_v4, 2 }
 0x265   : > { %v605_v6 = vadd.f32 %v604_v5, %v603_v4 }
 0x267   : > { %v606_v7 = vrot.slane %v605_v6, 1 }
 0x269   : > { %v607_v8 = vadd.f32 %v606_v7, %v605_v6 }
 0x26b   : > { %v608_v9 = vmul.f32 0.125, %v607_v8 }
 0x26d   : > { %918 = vmatmul.mubr.f32.vlgmr.msra.gmra.mxu1 %v608_v9 }
 0x32d   : > { %v692_v10 = vpop.f32.mrf.mxu1 }
 0x32e   : > { %v693_v11 = vadd.f32 %v692_v10, %v625_v1 }
 0x32f   : > { %v919_v12 = vpop.f32.mrf.mxu1 }
 0x330   : > { %696 = vst [vmem:[%s325_s28] sm:$0x1] %v693_v11 }
 0x331 PF: > { %s19_s30 = sadd.s32 1, %s936_s30  }
 0x332   : > { %p16_p4 = scmp.ge.s32.totalorder %s19_s30, 4  }
 0x334   :  { %18 = sbr.rel (!%p16_p4) target bundleno = 1 (0x1), region = 86 }

</bundles_post_ra>
